<compile_context>
chip_gen: v6e
topology: v6e:2x2x1
jax: 0.10.0
libtpu: 0.0.40
codegen_flags: <defaults>
</compile_context>

<pallas_src>
import functools

import jax
import jax.numpy as jnp
from jax.experimental import pallas as pl
from jax.experimental.pallas import tpu as pltpu

_LANE = 128
# Multiple of 16 (covers bf16 sublane packing). f32: 2 inputs x 2 pipeline
# buffers x 512 KiB = 2 MiB VMEM -> fits every generation with headroom.
_DEFAULT_TILE_ROWS = 1024


def _margin_loss_kernel(pos_ref, neg_ref, out_ref, acc_ref, *,
                        margin, n_true, tile_rows, need_mask):
    step = pl.program_id(0)

    @pl.when(step == 0)
    def _init():
        acc_ref[...] = jnp.zeros_like(acc_ref)

    # Upcast inside the kernel (free-ish VPU op, hidden under DMA).
    pos = pos_ref[...].astype(jnp.float32)
    neg = neg_ref[...].astype(jnp.float32)
    hinge = jnp.maximum(pos - neg + jnp.float32(margin), 0.0)

    if need_mask:
        # Mask out lane padding and any rows the boundary block over-reads.
        row = jax.lax.broadcasted_iota(jnp.int32, (tile_rows, _LANE), 0)
        lane = jax.lax.broadcasted_iota(jnp.int32, (tile_rows, _LANE), 1)
        flat_idx = step * (tile_rows * _LANE) + row * _LANE + lane
        hinge = jnp.where(flat_idx < n_true, hinge, 0.0)

    # Sublane-only reduce per step; cross-lane reduce deferred to finalize.
    acc_ref[...] += jnp.sum(hinge, axis=0, keepdims=True)

    @pl.when(step == pl.num_programs(0) - 1)
    def _finalize():
        out_ref[0, 0] = jnp.sum(acc_ref[...]) * jnp.float32(1.0 / n_true)


def margin_loss(positive_score, negative_score, margin=1.0):
    """Pallas TPU implementation of MarginLoss.forward. Returns scalar f32."""
    assert positive_score.shape == negative_score.shape
    pos = positive_score.reshape(-1)
    neg = negative_score.reshape(-1)
    n_true = int(pos.shape[0])
    assert n_true > 0

    # Pad flattened length up to a multiple of 128 lanes. When already
    # aligned this is a free reshape; pad values are irrelevant because the
    # kernel masks by flat index.
    n_pad = -(-n_true // _LANE) * _LANE
    if n_pad != n_true:
        pos = jnp.pad(pos, (0, n_pad - n_true))
        neg = jnp.pad(neg, (0, n_pad - n_true))

    rows = n_pad // _LANE
    pos2d = pos.reshape(rows, _LANE)
    neg2d = neg.reshape(rows, _LANE)

    # Full-array block when small (allowed: equals the full dim), else
    # 1024-row tiles (multiple of 8/16 -> valid for f32 and bf16).
    tile_rows = _DEFAULT_TILE_ROWS if rows >= _DEFAULT_TILE_ROWS else rows
    num_tiles = -(-rows // tile_rows)
    need_mask = (num_tiles * tile_rows * _LANE) != n_true

    kernel = functools.partial(
        _margin_loss_kernel,
        margin=float(margin), n_true=n_true,
        tile_rows=tile_rows, need_mask=need_mask)

    out = pl.pallas_call(
        kernel,
        out_shape=jax.ShapeDtypeStruct((1, 1), jnp.float32),
        grid=(num_tiles,),
        in_specs=[
            pl.BlockSpec((tile_rows, _LANE), lambda i: (i, 0)),
            pl.BlockSpec((tile_rows, _LANE), lambda i: (i, 0)),
        ],
        out_specs=pl.BlockSpec(memory_space=pltpu.SMEM),
        scratch_shapes=[pltpu.VMEM((1, _LANE), jnp.float32)],
        compiler_params=pltpu.CompilerParams(
            dimension_semantics=("arbitrary",)),
    )(pos2d, neg2d)

    return out[0, 0]


if __name__ == "__main__":
    key = jax.random.PRNGKey(0)
    k1, k2, k3, k4 = jax.random.split(key, 4)

    # Small example: a batch of 2x4x16 = 128 pairwise scores (f32, aligned).
    pos = jax.random.normal(k1, (2, 4, 16), dtype=jnp.float32)
    neg = jax.random.normal(k2, (2, 4, 16), dtype=jnp.float32)
    res = jax.block_until_ready(margin_loss(pos, neg, margin=1.0))
    ref = jnp.mean(jnp.maximum(pos - neg + 1.0, 0.0))
    assert jnp.allclose(res, ref, atol=1e-6, rtol=1e-6), (res, ref)

    # Larger ragged bf16 case: exercises the multi-tile reduction grid,
    # partial boundary block, in-kernel mask, and in-kernel bf16->f32 upcast.
    pos_b = jax.random.normal(k3, (9, 120, 131), dtype=jnp.bfloat16)
    neg_b = jax.random.normal(k4, (9, 120, 131), dtype=jnp.bfloat16)
    res_b = jax.block_until_ready(margin_loss(pos_b, neg_b, margin=0.5))
    ref_b = jnp.mean(jnp.maximum(
        pos_b.astype(jnp.float32) - neg_b.astype(jnp.float32) + 0.5, 0.0))
    assert jnp.allclose(res_b, ref_b, atol=1e-4, rtol=1e-4), (res_b, ref_b)

    print("KERNEL_OK")
</pallas_src>

<mosaic_0001>
module attributes {stable_mosaic.version = 11 : i64} {
  func.func @_margin_loss_kernel(%arg0: i32, %arg1: memref<1x128xf32, #tpu.memory_space<vmem>>, %arg2: memref<1x128xf32, #tpu.memory_space<vmem>>, %arg3: memref<1x1xf32, #tpu.memory_space<smem>>, %arg4: memref<1x128xf32, #tpu.memory_space<vmem>>) attributes {dimension_semantics = [#tpu.dimension_semantics<arbitrary>], iteration_bounds = array<i64: 1>, scalar_prefetch = 0 : i64, scratch_operands = 1 : i64, tpu.core_type = #tpu.core_type<tc>, window_params = [{transform_indices = @transform_0, window_bounds = array<i64: 1, 128>}, {transform_indices = @transform_1, window_bounds = array<i64: 1, 128>}, {transform_indices = @transform_2, window_bounds = array<i64: 1, 1>}]} {
    %c0_i32 = arith.constant 0 : i32
    %0 = arith.cmpi eq, %arg0, %c0_i32 : i32
    %1 = arith.extui %0 : i1 to i32
    %c0_i32_0 = arith.constant 0 : i32
    %2 = arith.cmpi ne, %1, %c0_i32_0 : i32
    scf.if %2 {
      %cst_12 = arith.constant 0.000000e+00 : f32
      %18 = vector.broadcast %cst_12 : f32 to vector<1x128xf32>
      %c0_13 = arith.constant 0 : index
      %c0_14 = arith.constant 0 : index
      %19 = vector.load %arg4[%c0_13, %c0_14] : memref<1x128xf32, #tpu.memory_space<vmem>>, vector<1x128xf32>
      tpu.vector_store %arg4[%c0_13, %c0_14], %18 {strides = array<i32>} : memref<1x128xf32, #tpu.memory_space<vmem>>, vector<1x128xf32>,
    } else {
    }
    %c0 = arith.constant 0 : index
    %c0_1 = arith.constant 0 : index
    %3 = vector.load %arg1[%c0, %c0_1] : memref<1x128xf32, #tpu.memory_space<vmem>>, vector<1x128xf32>
    %c0_2 = arith.constant 0 : index
    %c0_3 = arith.constant 0 : index
    %4 = vector.load %arg2[%c0_2, %c0_3] : memref<1x128xf32, #tpu.memory_space<vmem>>, vector<1x128xf32>
    %5 = arith.subf %3, %4 : vector<1x128xf32>
    %cst = arith.constant 1.000000e+00 : f32
    %6 = vector.broadcast %cst : f32 to vector<1x128xf32>
    %7 = arith.addf %5, %6 : vector<1x128xf32>
    %cst_4 = arith.constant 0.000000e+00 : f32
    %8 = vector.broadcast %cst_4 : f32 to vector<1x128xf32>
    %9 = arith.maximumf %7, %8 : vector<1x128xf32>
    %c0_5 = arith.constant 0 : index
    %c0_6 = arith.constant 0 : index
    %10 = vector.load %arg4[%c0_5, %c0_6] : memref<1x128xf32, #tpu.memory_space<vmem>>, vector<1x128xf32>
    %cst_7 = arith.constant dense<0.000000e+00> : vector<128xf32>
    %11 = vector.multi_reduction <add>, %9, %cst_7 [0] : vector<1x128xf32> to vector<128xf32>
    %12 = vector.shape_cast %11 : vector<128xf32> to vector<1x128xf32>
    %13 = arith.addf %10, %12 : vector<1x128xf32>
    %c0_8 = arith.constant 0 : index
    %c0_9 = arith.constant 0 : index
    %14 = vector.load %arg4[%c0_8, %c0_9] : memref<1x128xf32, #tpu.memory_space<vmem>>, vector<1x128xf32>
    tpu.vector_store %arg4[%c0_8, %c0_9], %13 {strides = array<i32>} : memref<1x128xf32, #tpu.memory_space<vmem>>, vector<1x128xf32>,
    %c0_i32_10 = arith.constant 0 : i32
    %15 = arith.cmpi eq, %arg0, %c0_i32_10 : i32
    %16 = arith.extui %15 : i1 to i32
    %c0_i32_11 = arith.constant 0 : i32
    %17 = arith.cmpi ne, %16, %c0_i32_11 : i32
    scf.if %17 {
      %c0_12 = arith.constant 0 : index
      %c0_13 = arith.constant 0 : index
      %18 = vector.load %arg4[%c0_12, %c0_13] : memref<1x128xf32, #tpu.memory_space<vmem>>, vector<1x128xf32>
      %19 = vector.shape_cast %18 : vector<1x128xf32> to vector<1x1x128xf32>
      %cst_14 = arith.constant dense<0.000000e+00> : vector<1xf32>
      %20 = vector.multi_reduction <add>, %19, %cst_14 [1, 2] : vector<1x1x128xf32> to vector<1xf32>
      %21 = vector.shape_cast %20 : vector<1xf32> to vector<1x1x1xf32>
      %22 = vector.extract %21[0, 0, 0] : f32 from vector<1x1x1xf32>
      %cst_15 = arith.constant 7.812500e-03 : f32
      %23 = arith.mulf %22, %cst_15 : f32
      %c0_16 = arith.constant 0 : index
      %c0_17 = arith.constant 0 : index
      %24 = memref.load %arg3[%c0_16, %c0_17] : memref<1x1xf32, #tpu.memory_space<smem>>
      memref.store %23, %arg3[%c0_16, %c0_17] : memref<1x1xf32, #tpu.memory_space<smem>>
    } else {
    }
    return
  }
  func.func @transform_0(%arg0: i32) -> (i32, i32) {
    %c0_i32 = arith.constant 0 : i32
    %c0_i32_0 = arith.constant 0 : i32
    return %arg0, %c0_i32 : i32, i32
  }
  func.func @transform_1(%arg0: i32) -> (i32, i32) {
    %c0_i32 = arith.constant 0 : i32
    %c0_i32_0 = arith.constant 0 : i32
    return %arg0, %c0_i32 : i32, i32
  }
  func.func @transform_2(%arg0: i32) -> (i32, i32) {
    %c0_i32 = arith.constant 0 : i32
    %c0_i32_0 = arith.constant 0 : i32
    %c0_i32_1 = arith.constant 0 : i32
    return %c0_i32, %c0_i32_0 : i32, i32
  }
}

</mosaic_0001>

<bundles_post_ra>
// kernel: tpu_custom_call.1
= control target key start
LH: loop header
LB: loop body
LE: loop exit
PB: predicated region body
PF: predicated region fallthrough
CT: control target
= control target key end

     0   :  { %7 = vsyncpa [#allocation4], 0  ;;  %s134_s0 = inlined_call_operand.hbm [shape: f32[1,128], index: 0, kind: input, shape index: {}]   ;;  %s135_s1 = inlined_call_operand.vmem [shape: f32[1,128], index: 1, kind: input, shape index: {}]   ;;  %s136_s2 = inlined_call_operand.hbm [shape: f32[1,1], index: 2, kind: output, shape index: {}]  }
   0x1   :  { %8 = vsyncpa [#allocation5], 0  ;;  %s107_s9 = smov [#allocation3]  }
   0x2   :  { %s15_s10 = sshll.u32 %s107_s9, 4  ;;  %s16_s10 = int_to_ptr.vmem [resolvable:$true] %s15_s10 }
   0x3   :  { %s83_s11 = scalar_lea.vmem %s16_s10, 16  ;;  %s87_s12 = scalar_lea.vmem %s16_s10, 32 }
   0x4   :  { %p84_p0 = scmp.ne.s32.totalorder %s16_s10, %s83_s11  ;;  %p88_p1 = scmp.lt.s32.totalorder %s16_s10, %s16_s10 }
   0x5   :  { %p89_p2 = scmp.lt.s32.totalorder %s87_s12, %s83_s11 }
   0x7   :  { %p90_p3 = por %p89_p2, %p88_p1 }
   0x9   :  { %p91_p4 = pnand %p90_p3, %p84_p0 }
   0xb   :  { %94 = shalt.err (!%p91_p4)
}
   0xc   :  { %18 = dma.hbm_to_vmem [thread:$0]  %s134_s0, 16, %s16_s10, [#allocation4]  }
   0xd   :  { %103 = dma.done.wait [#allocation4], 16  }
   0xe   :  { %104 = vsyncadd [#allocation4], 4294967280  ;;  %v108_v0 = vmov 0.0   ;;  %v29_v1 = vld [vmem:[#allocation3] sm:$0x1]  ;;  %vm42_vm0 = vcmask 1040384  }
   0xf   :  { %28 = vst [vmem:[#allocation2] sm:$0x1] %v108_v0  ;;  %v30_v2 = vld [vmem:[%s135_s1] sm:$0x1]  ;;  %s109_s17 = smov [#allocation6]  }
  0x10   :  { %v31_v3 = vsub.f32 %v29_v1, %v30_v2 }
  0x12   :  { %v32_v4 = vadd.f32 1.0, %v31_v3 }
  0x14   :  { %v33_v6 = vmax.f32 %v32_v4, 0.0 }
  0x16   :  { %v34_v5 = vld [vmem:[#allocation2] sm:$0x1] }
  0x17   :  { %v36_v7 = vadd.f32 %v34_v5, %v33_v6 }
  0x19   :  { %37 = vst [vmem:[#allocation2] sm:$0x1] %v36_v7 }
  0x20   :  { %v41_v8 = vld [vmem:[#allocation2] sm:$0x1] }
  0x21   :  { %v43_v9 = vsel %vm42_vm0, %v41_v8, 0.0 }
  0x22   :  { %44 = vadd.xlane.f32.xlu0 %v43_v9 }
  0xab   :  { %v45_v10 = vpop.xlane.xlu0 %44 }
  0xac   :  { %v46_v11 = vrot.slane %v45_v10, 4 }
  0xae   :  { %v47_v12 = vadd.f32 %v46_v11, %v45_v10 }
  0xb0   :  { %v48_v13 = vrot.slane %v47_v12, 2 }
  0xb2   :  { %v49_v14 = vadd.f32 %v48_v13, %v47_v12 }
  0xb4   :  { %v50_v15 = vrot.slane %v49_v14, 1 }
  0xb6   :  { %v51_v16 = vadd.f32 %v50_v15, %v49_v14 }
  0xb8   :  { %70 = vpush %v51_v16 }
  0xe9   :  { %s71_s0 = spop %70 }
  0xea   :  { %s53_s1 = smul.f32 0.0078125, %s71_s0 }
  0xec   :  { %55 = sst [smem:[#allocation6]] %s53_s1 }
  0xed   :  { %63 = dma.smem_to_hbm %s109_s17, 16, %s136_s2, [#allocation5]  }
  0xee   :  { %105 = dma.done.wait [#allocation5], 16  }
  0xef   :  { %106 = vsyncadd [#allocation5], 4294967280 }
  0xf0   :  { %67 = sfence }
  0xf1   :  { %68 = vsyncpa [#allocation4], 1 }
  0xf2   :  { %69 = vsyncpa [#allocation5], 1 }

</bundles_post_ra>
